<compile_context>
chip_gen: v5e
topology: v5e:2x2
jax: 0.10.0
libtpu: 0.0.40
codegen_flags: <defaults>
</compile_context>

<pallas_src>
import jax
import jax.numpy as jnp
import numpy as np
from jax.experimental import pallas as pl
from jax.experimental.pallas import tpu as pltpu


def _features_embedding_kernel(ids_ref, *refs):
    # ids_ref:    VMEM (TB, NF) int32     -- per-field offsets already folded in
    # refs[:-1]:  VMEM (vocab, N_pad) bf16 block-diagonal table components (resident)
    # refs[-1]:   VMEM (TB, N_pad)        -- lane-dense output tile
    *bd_refs, out_ref = refs
    tb, nf = ids_ref.shape
    vocab = bd_refs[0].shape[0]

    ids = ids_ref[...]                                           # (TB, NF) int32
    col = jax.lax.broadcasted_iota(jnp.int32, (tb, vocab), 1)    # (TB, V)

    # Multi-hot routing matrix: exactly one 1 per field per row (field ranges are
    # disjoint), exact in bf16.  Static unroll over the small field axis.
    hot = (ids[:, 0:1] == col).astype(jnp.bfloat16)
    for f in range(1, nf):
        hot = hot + (ids[:, f:f + 1] == col).astype(jnp.bfloat16)

    # One fused MXU matmul per bf16 table component, f32 accumulation.
    acc = jnp.dot(hot, bd_refs[0][...], preferred_element_type=jnp.float32)
    for r in bd_refs[1:]:
        acc = acc + jnp.dot(hot, r[...], preferred_element_type=jnp.float32)

    out_ref[...] = acc.astype(out_ref.dtype)                     # full-width store


def _split_bf16(t_f32, n_components):
    """Split an f32 array into n bf16 components whose (f32) sum reproduces it."""
    comps, rem = [], t_f32
    for _ in range(n_components):
        c = rem.astype(jnp.bfloat16)
        comps.append(c)
        rem = rem - c.astype(jnp.float32)
    return comps


def _block_diag(component, field_dims, offsets_np, n_pad):
    """(vocab, ED) -> (vocab, n_pad): route vocab row v to its field's column block."""
    vocab, ed = component.shape
    bd = jnp.zeros((vocab, n_pad), dtype=component.dtype)
    for f, fd in enumerate(field_dims):
        r0 = int(offsets_np[f])
        bd = bd.at[r0:r0 + int(fd), f * ed:(f + 1) * ed].set(component[r0:r0 + int(fd)])
    return bd


def features_embedding(x, table, field_dims, *, batch_tile=1024, out_dtype=None):
    """x: (batch, num_fields) int, table: (sum(field_dims), embed_dim),
    returns (batch, num_fields, embed_dim)."""
    batch, num_fields = x.shape
    vocab, embed_dim = table.shape
    assert num_fields == len(field_dims)
    assert vocab == int(np.sum(field_dims))
    out_dtype = table.dtype if out_dtype is None else out_dtype

    n_out = num_fields * embed_dim
    n_pad = ((n_out + 127) // 128) * 128          # lane-dense, unmasked stores

    offsets_np = np.array((0, *np.cumsum(field_dims)[:-1]), dtype=np.int32)

    # ---- one-time (module-init) precompute: bf16 split + block-diag routing ----
    if table.dtype == jnp.bfloat16:
        comps = [table]                            # bf16 table: single exact pass
    else:
        comps = _split_bf16(table.astype(jnp.float32), 3)
    bd_tables = [_block_diag(c, field_dims, offsets_np, n_pad) for c in comps]

    # ---- per-call: fold offsets, pick an 8-aligned batch tile, pad, launch ----
    ids = x.astype(jnp.int32) + jnp.asarray(offsets_np)[None, :]

    batch8 = ((batch + 7) // 8) * 8
    tb = max(8, ((min(int(batch_tile), batch8) + 7) // 8) * 8)
    if batch8 >= 16:
        # guarantee >= 2 grid steps so ("parallel",) can use both v7x TensorCores
        tb = min(tb, ((batch8 // 2 + 7) // 8) * 8)
    padded = ((batch + tb - 1) // tb) * tb
    if padded != batch:
        ids = jnp.pad(ids, ((0, padded - batch), (0, 0)))

    table_spec = pl.BlockSpec((vocab, n_pad), lambda i: (0, 0))   # resident, invariant
    out2d = pl.pallas_call(
        _features_embedding_kernel,
        out_shape=jax.ShapeDtypeStruct((padded, n_pad), out_dtype),
        grid=(padded // tb,),
        in_specs=[pl.BlockSpec((tb, num_fields), lambda i: (i, 0))]
                 + [table_spec] * len(bd_tables),
        out_specs=pl.BlockSpec((tb, n_pad), lambda i: (i, 0)),
        compiler_params=pltpu.CompilerParams(
            dimension_semantics=("parallel",),
            vmem_limit_bytes=48 * 1024 * 1024,     # fits v7x's 64 MiB physical VMEM
        ),
    )(ids, *bd_tables)

    return out2d[:batch, :n_out].reshape(batch, num_fields, embed_dim)


if __name__ == "__main__":
    # Module hyper-params (synthetic, small).
    field_dims = (10, 7, 5, 12)        # -> vocab = 34
    embed_dim = 32
    batch = 10                         # exercises padding + a 2-step parallel grid
    num_fields = len(field_dims)
    vocab = int(sum(field_dims))

    key = jax.random.PRNGKey(0)
    k_w, k_x = jax.random.split(key)

    # torch.nn.init.xavier_uniform_ on (vocab, embed_dim):
    bound = float(np.sqrt(6.0 / (vocab + embed_dim)))
    table = jax.random.uniform(
        k_w, (vocab, embed_dim), dtype=jnp.float32, minval=-bound, maxval=bound
    )

    # Indices: each field f draws from [0, field_dims[f]).
    cols = []
    for fd in field_dims:
        k_x, k_c = jax.random.split(k_x)
        cols.append(jax.random.randint(k_c, (batch, 1), 0, fd, dtype=jnp.int32))
    x = jnp.concatenate(cols, axis=1)  # (batch, num_fields)

    out = features_embedding(x, table, field_dims)
    out = jax.block_until_ready(out)

    # Pure-JAX reference of the PyTorch forward.
    offsets = jnp.asarray(np.array((0, *np.cumsum(field_dims)[:-1]), dtype=np.int32))
    ref = table[(x + offsets[None, :]).astype(jnp.int32)]
    assert out.shape == (batch, num_fields, embed_dim)
    np.testing.assert_allclose(np.asarray(out), np.asarray(ref), rtol=1e-5, atol=1e-6)

    print("KERNEL_OK")
</pallas_src>

<mosaic_0001>
module attributes {stable_mosaic.version = 11 : i64} {
  func.func @_features_embedding_kernel(%arg0: i32, %arg1: memref<8x4xi32, #tpu.memory_space<vmem>>, %arg2: memref<34x128xbf16, #tpu.memory_space<vmem>>, %arg3: memref<34x128xbf16, #tpu.memory_space<vmem>>, %arg4: memref<34x128xbf16, #tpu.memory_space<vmem>>, %arg5: memref<8x128xf32, #tpu.memory_space<vmem>>) attributes {dimension_semantics = [#tpu.dimension_semantics<parallel>], iteration_bounds = array<i64: 2>, scalar_prefetch = 0 : i64, scratch_operands = 0 : i64, tpu.core_type = #tpu.core_type<tc>, window_params = [{transform_indices = @transform_0, window_bounds = array<i64: 8, 4>}, {pipeline_mode = #tpu.pipeline_mode<synchronous>, transform_indices = @transform_1, window_bounds = array<i64: 34, 128>}, {pipeline_mode = #tpu.pipeline_mode<synchronous>, transform_indices = @transform_2, window_bounds = array<i64: 34, 128>}, {pipeline_mode = #tpu.pipeline_mode<synchronous>, transform_indices = @transform_3, window_bounds = array<i64: 34, 128>}, {transform_indices = @transform_4, window_bounds = array<i64: 8, 128>}]} {
    %c0 = arith.constant 0 : index
    %c0_0 = arith.constant 0 : index
    %0 = vector.load %arg1[%c0, %c0_0] : memref<8x4xi32, #tpu.memory_space<vmem>>, vector<8x4xi32>
    %1 = tpu.iota {dimensions = array<i32: 1>} : vector<8x34xi32>
    %2 = vector.extract_strided_slice %0 {offsets = [0, 0], sizes = [8, 1], strides = [1, 1]} : vector<8x4xi32> to vector<8x1xi32>
    %3 = vector.broadcast %2 : vector<8x1xi32> to vector<8x34xi32>
    %4 = arith.cmpi eq, %3, %1 : vector<8x34xi32>
    %5 = arith.extui %4 : vector<8x34xi1> to vector<8x34xi32>
    %6 = arith.sitofp %5 : vector<8x34xi32> to vector<8x34xf32>
    %7 = arith.truncf %6 : vector<8x34xf32> to vector<8x34xbf16>
    %8 = vector.extract_strided_slice %0 {offsets = [0, 1], sizes = [8, 1], strides = [1, 1]} : vector<8x4xi32> to vector<8x1xi32>
    %9 = vector.broadcast %8 : vector<8x1xi32> to vector<8x34xi32>
    %10 = arith.cmpi eq, %9, %1 : vector<8x34xi32>
    %11 = arith.extui %10 : vector<8x34xi1> to vector<8x34xi32>
    %12 = arith.sitofp %11 : vector<8x34xi32> to vector<8x34xf32>
    %13 = arith.truncf %12 : vector<8x34xf32> to vector<8x34xbf16>
    %14 = arith.addf %7, %13 : vector<8x34xbf16>
    %15 = vector.extract_strided_slice %0 {offsets = [0, 2], sizes = [8, 1], strides = [1, 1]} : vector<8x4xi32> to vector<8x1xi32>
    %16 = vector.broadcast %15 : vector<8x1xi32> to vector<8x34xi32>
    %17 = arith.cmpi eq, %16, %1 : vector<8x34xi32>
    %18 = arith.extui %17 : vector<8x34xi1> to vector<8x34xi32>
    %19 = arith.sitofp %18 : vector<8x34xi32> to vector<8x34xf32>
    %20 = arith.truncf %19 : vector<8x34xf32> to vector<8x34xbf16>
    %21 = arith.addf %14, %20 : vector<8x34xbf16>
    %22 = vector.extract_strided_slice %0 {offsets = [0, 3], sizes = [8, 1], strides = [1, 1]} : vector<8x4xi32> to vector<8x1xi32>
    %23 = vector.broadcast %22 : vector<8x1xi32> to vector<8x34xi32>
    %24 = arith.cmpi eq, %23, %1 : vector<8x34xi32>
    %25 = arith.extui %24 : vector<8x34xi1> to vector<8x34xi32>
    %26 = arith.sitofp %25 : vector<8x34xi32> to vector<8x34xf32>
    %27 = arith.truncf %26 : vector<8x34xf32> to vector<8x34xbf16>
    %28 = arith.addf %21, %27 : vector<8x34xbf16>
    %c0_1 = arith.constant 0 : index
    %c0_2 = arith.constant 0 : index
    %29 = vector.load %arg2[%c0_1, %c0_2] : memref<34x128xbf16, #tpu.memory_space<vmem>>, vector<34x128xbf16>
    %cst = arith.constant dense<0.000000e+00> : vector<8x128xf32>
    %30 = tpu.matmul %28, %29, %cst {dimension_numbers = #tpu.dot_dimension_numbers<[1], [0], [0], [1], [0, 0, 1, 1], [], []>} : vector<8x34xbf16>, vector<34x128xbf16>, vector<8x128xf32> -> vector<8x128xf32>
    %c0_3 = arith.constant 0 : index
    %c0_4 = arith.constant 0 : index
    %31 = vector.load %arg3[%c0_3, %c0_4] : memref<34x128xbf16, #tpu.memory_space<vmem>>, vector<34x128xbf16>
    %cst_5 = arith.constant dense<0.000000e+00> : vector<8x128xf32>
    %32 = tpu.matmul %28, %31, %cst_5 {dimension_numbers = #tpu.dot_dimension_numbers<[1], [0], [0], [1], [0, 0, 1, 1], [], []>} : vector<8x34xbf16>, vector<34x128xbf16>, vector<8x128xf32> -> vector<8x128xf32>
    %33 = arith.addf %30, %32 : vector<8x128xf32>
    %c0_6 = arith.constant 0 : index
    %c0_7 = arith.constant 0 : index
    %34 = vector.load %arg4[%c0_6, %c0_7] : memref<34x128xbf16, #tpu.memory_space<vmem>>, vector<34x128xbf16>
    %cst_8 = arith.constant dense<0.000000e+00> : vector<8x128xf32>
    %35 = tpu.matmul %28, %34, %cst_8 {dimension_numbers = #tpu.dot_dimension_numbers<[1], [0], [0], [1], [0, 0, 1, 1], [], []>} : vector<8x34xbf16>, vector<34x128xbf16>, vector<8x128xf32> -> vector<8x128xf32>
    %36 = arith.addf %33, %35 : vector<8x128xf32>
    %c0_9 = arith.constant 0 : index
    %c0_10 = arith.constant 0 : index
    %37 = vector.load %arg5[%c0_9, %c0_10] : memref<8x128xf32, #tpu.memory_space<vmem>>, vector<8x128xf32>
    tpu.vector_store %arg5[%c0_9, %c0_10], %36 {strides = array<i32>} : memref<8x128xf32, #tpu.memory_space<vmem>>, vector<8x128xf32>,
    return
  }
  func.func @transform_0(%arg0: i32) -> (i32, i32) {
    %c0_i32 = arith.constant 0 : i32
    %c0_i32_0 = arith.constant 0 : i32
    return %arg0, %c0_i32 : i32, i32
  }
  func.func @transform_1(%arg0: i32) -> (i32, i32) {
    %c0_i32 = arith.constant 0 : i32
    %c0_i32_0 = arith.constant 0 : i32
    %c0_i32_1 = arith.constant 0 : i32
    return %c0_i32, %c0_i32_0 : i32, i32
  }
  func.func @transform_2(%arg0: i32) -> (i32, i32) {
    %c0_i32 = arith.constant 0 : i32
    %c0_i32_0 = arith.constant 0 : i32
    %c0_i32_1 = arith.constant 0 : i32
    return %c0_i32, %c0_i32_0 : i32, i32
  }
  func.func @transform_3(%arg0: i32) -> (i32, i32) {
    %c0_i32 = arith.constant 0 : i32
    %c0_i32_0 = arith.constant 0 : i32
    %c0_i32_1 = arith.constant 0 : i32
    return %c0_i32, %c0_i32_0 : i32, i32
  }
  func.func @transform_4(%arg0: i32) -> (i32, i32) {
    %c0_i32 = arith.constant 0 : i32
    %c0_i32_0 = arith.constant 0 : i32
    return %arg0, %c0_i32 : i32, i32
  }
}

</mosaic_0001>

<bundles_post_ra>
// kernel: tpu_custom_call.1
= control target key start
LH: loop header
LB: loop body
LE: loop exit
PB: predicated region body
PF: predicated region fallthrough
CT: control target
= control target key end

     0   :  { %9 = vsyncpa [#allocation3], 0  ;;  %s891_s0 = inlined_call_operand.vmem [shape: s32[16,4], index: 0, kind: input, shape index: {}]   ;;  %s892_s1 = inlined_call_operand.vmem [shape: bf16[34,128], index: 1, kind: input, shape index: {}]   ;;  %s893_s2 = inlined_call_operand.hbm [shape: bf16[34,128], index: 2, kind: input, shape index: {}]   ;;  %s894_s3 = inlined_call_operand.hbm [shape: bf16[34,128], index: 3, kind: input, shape index: {}]   ;;  %s895_s4 = inlined_call_operand.hbm [shape: f32[16,128], index: 4, kind: output, shape index: {}]  }
   0x1   :  { %10 = vsyncpa [#allocation6], 0 }
   0x2   :  { %11 = vsyncpa [#allocation4], 0 }
   0x3   :  { %13 = vsyncpa [#allocation4 + $0x1], 0  ;;  %s772_s15 = smov 0   ;;  %s774_s16 = smov 0  }
   0x4   :  { %s776_s17 = smov 0   ;;  %s778_s18 = smov 0  }
   0x5 LB: > { %s793_s19 = sadd.s32 4294967295, %s736_s18   ;;  %s483_s20 = sadd.s32 4294967294, %s736_s18   ;;  %s736_s18 = sphi %s778_s18, %s902_s18   ;;  %s732_s17 = sphi %s776_s17, %s901_s17   ;;  %s728_s16 = sphi %s774_s16, %s900_s16   ;;  %s724_s15 = sphi %s772_s15, %s899_s15  }
   0x6   : > { %s797_s21 = sadd.s32 1, %s736_s18   ;;  %s115_s22 = sadd.s32 1, %s732_s17 }
   0x7   : > { %s112_s23 = ssub.s32 %s736_s18, %s797_s21  ;;  %p125_p0 = scmp.ne.s32.totalorder %s732_s17, %s728_s16 }
   0x8   : > { %p113_p1 = scmp.eq.s32.totalorder %s112_s23, 0  ;;  %p126_p2 = scmp.eq.s32.totalorder %s793_s19, 1 }
   0x9   : > { %p131_p3 = scmp.ne.s32.totalorder %s728_s16, %s724_s15  ;;  %p132_p4 = scmp.eq.s32.totalorder %s483_s20, 1 }
   0xa   : > { %s808_s24 = scalar_select %p113_p1, %s732_s17, %s115_s22  }
   0xb   : > { %p810_p5 = por %p126_p2, %p125_p0  ;;  %p814_p6 = por %p132_p4, %p131_p3 }
   0xc   : > { %p484_p7 = scmp.ge.s32.totalorder %s736_s18, 1  ;;  %p139_p8 = scmp.lt.s32.totalorder %s736_s18, 3 }
   0xd   : > { %p555_p9 = scmp.eq.s32.totalorder %s793_s19, 0  ;;  %s153_s30 = sshll.u32 %s893_s2, 4  ;;  %s154_s30 = int_to_ptr.hbm [resolvable:$true] %s153_s30 }
   0xe   : > { %p821_p10 = pnand %p484_p7, %p139_p8  ;;  %s738_s5 = smov [#allocation2]  }
   0xf   : > { %s155_s6 = sshll.u32 %s738_s5, 4  ;;  %s167_s9 = sshll.u32 %s894_s3, 4  ;;  %s156_s6 = int_to_ptr.vmem [resolvable:$true] %s155_s6  ;;  %s168_s9 = int_to_ptr.hbm [resolvable:$true] %s167_s9 }
  0x10   : > { %p544_p11 = pneg %p821_p10  ;;  %s739_s10 = smov 64  }
  0x11   : > { %s740_s11 = smov 4   ;;  %s741_s12 = smov [#allocation5]  }
  0x12   : > { %p545_p12 = pnand %p555_p9, %p544_p11  ;;  %s169_s13 = sshll.u32 %s741_s12, 4  ;;  %s170_s13 = int_to_ptr.vmem [resolvable:$true] %s169_s13 }
  0x13   : > { %192 = sbr.rel (%p821_p10) target bundleno = 317 (0x13d), region = 36 }
  0x14   : > { %547 = dma.hbm_to_vmem [thread:$0]  (!%p545_p12), %s154_s30, 320, %s156_s6, [#allocation3], %s739_s10, %s739_s10, %s740_s11  }
  0x15   : > { %550 = dma.hbm_to_vmem [thread:$0]  (!%p545_p12), %s168_s9, 320, %s170_s13, [#allocation6], %s739_s10, %s739_s10, %s740_s11  }
  0x18   : > { %711 = dma.done.wait (%p555_p9), [#allocation3], 320  }
  0x19   : > { %713 = vsyncadd (%p555_p9), [#allocation3], 4294966976 }
  0x1a   : > { %715 = dma.done.wait (%p555_p9), [#allocation6], 320  }
  0x1b   : > { %717 = vsyncadd (%p555_p9), [#allocation6], 4294966976  ;;  %p223_p13 = scmp.lt.s32.totalorder %s793_s19, 1  ;;  %v742_v0 = vmov 0   ;;  %v743_v1 = vmov 2   ;;  %v744_v3 = vmov 1   ;;  %v229_v23 = vlaneseq }
  0x1c   : > { %601 = vset.pattern.permute.xlu0 %v742_v0  ;;  %603 = vset.pattern.permute.xlu1 %v743_v1  ;;  %v745_v4 = vmov 3   ;;  %v280_v5 = vld [vmem:[#allocation2 + $0x10] sm:$0x1]  ;;  %v352_v7 = vld [vmem:[#allocation5 + $0x10] sm:$0x1]  ;;  %vm300_vm0 = vcmask 1040384  }
  0x1d   : > { %s224_s14 = scalar_select %p223_p13, %s793_s19, 1  ;;  %v275_v6 = vld [vmem:[%s892_s1 + $0x10] sm:$0x1]  ;;  %v290_v8 = vunpack.c.l.b16 %v280_v5  ;;  %v362_v10 = vunpack.c.l.b16 %v352_v7  ;;  %v531_v17 = vld [vmem:[#allocation2 + $0x8] sm:$0xff]  ;;  %v533_v19 = vld [vmem:[#allocation5 + $0x8] sm:$0xff]  ;;  %v230_v25 = vand.u32 127, %v229_v23 }
  0x1e   : > { %v326_v9 = vunpack.c.l.b16 %v275_v6  ;;  %v529_v18 = vld [vmem:[%s892_s1 + $0x8] sm:$0xff]  ;;  %v530_v20 = vld [vmem:[#allocation2] sm:$0xff]  ;;  %v532_v22 = vld [vmem:[#allocation5] sm:$0xff]  ;;  %v746_v28 = vmov 0.0   ;;  %vm296_vm5 = vcmask 277504   ;;  %s220_s8 = sand.u32 1, %s728_s16  }
  0x1f   : > { %s492_s20 = sshll.u32 %s224_s14, 3  ;;  %v293_v11 = vpack.c.b16 %v290_v8, %v290_v8  ;;  %v365_v13 = vpack.c.b16 %v362_v10, %v362_v10  ;;  %v528_v21 = vld [vmem:[%s892_s1] sm:$0xff]  ;;  %s525_s9 = sshll.u32 %s793_s19, 3 }
  0x20   : > { %s226_s27 = scalar_lea.vmem %s891_s0, %s492_s20  ;;  %v329_v12 = vpack.c.b16 %v326_v9, %v326_v9  ;;  %s491_s10 = sshll.u32 %s220_s8, 3 }
  0x21   : > { %v228_v2 = vld [vmem:[%s226_s27] sm:$0xff]  ;;  %v302_v14 = vsel %vm300_vm0, %v293_v11, 0  ;;  %v369_v16 = vsel %vm300_vm0, %v365_v13, 0  ;;  %s397_s13 = scalar_lea.hbm %s895_s4, %s525_s9  ;;  %s222_s14 = scalar_lea.vmem [#allocation7], %s491_s10 }
  0x22   : > { %232 = vperm.xlu0 %601, %v228_v2   ;;  %250 = vperm.xlu1 %603, %v228_v2   ;;  %v333_v15 = vsel %vm300_vm0, %v329_v12, 0  ;;  %s399_s20 = sshll.u32 %s222_s14, 4  ;;  %s401_s22 = sshll.u32 %s397_s13, 4  ;;  %s400_s20 = int_to_ptr.vmem [resolvable:$true] %s399_s20  ;;  %s402_s22 = int_to_ptr.hbm [resolvable:$true] %s401_s22 }
  0x23   : > { %309 = vmatpush.bf16.msra.mxu0 %v302_v14  ;;  %340 = vmatpush.bf16.msra.mxu1 %v333_v15  ;;  %s387_s19 = scalar_lea.sflag [#allocation4], %s220_s8  ;;  %s680_s23 = sshra.s32 %s402_s22, 4  ;;  %s681_s23 = int_to_ptr.hbm [resolvable:$true] %s680_s23 }
  0x24   : > { %376 = vmatpush.bf16.msra.mxu2 %v369_v16  ;;  %s682_s27 = scalar_lea.hbm %s681_s23, 8  ;;  %s686_s30 = scalar_lea.hbm %s895_s4, 16 }
  0x25   : > { %p683_p0 = scmp.ne.s32.totalorder %s681_s23, %s682_s27  ;;  %p687_p3 = scmp.lt.s32.totalorder %s681_s23, %s895_s4 }
  0x26   : > { %p688_p4 = scmp.lt.s32.totalorder %s686_s30, %s682_s27 }
  0x27   : > { %310 = vmatpush.bf16.msra.mxu0 %v531_v17  ;;  %341 = vmatpush.bf16.msra.mxu1 %v529_v18  ;;  %p684_p1 = pnand %p683_p0, %p810_p5 }
  0x28   : > { %377 = vmatpush.bf16.msra.mxu2 %v533_v19  ;;  %p689_p7 = por %p688_p4, %p687_p3 }
  0x29   : > { %p685_p2 = pneg %p684_p1 }
  0x2a   : > { %602 = vset.pattern.permute.xlu0 %v744_v3  ;;  %604 = vset.pattern.permute.xlu1 %v745_v4 }
  0x2b   : > { %239 = vperm.xlu0 %602, %v228_v2   ;;  %261 = vperm.xlu1 %604, %v228_v2   ;;  %p690_p8 = pnand %p689_p7, %p685_p2 }
  0x2c   : > { %311 = vmatpush.bf16.msra.mxu0 %v530_v20  ;;  %342 = vmatpush.bf16.msra.mxu1 %v528_v21 }
  0x2d   : > { %378 = vmatpush.bf16.msra.mxu2 %v532_v22 }
  0x33   : > { %605 = vset.pattern.permute.xlu0 %v745_v4 }
  0x94   : > { %v233_v24 = vpop.permute.xlu0 %232  ;;  %v251_v26 = vpop.permute.xlu1 %250 }
  0x95   : > { %vm234_vm1 = vcmp.eq.s32.totalorder %v233_v24, %v230_v25  ;;  %vm252_vm3 = vcmp.eq.s32.totalorder %v251_v26, %v230_v25 }
  0x96   : > { %v493_v29 = vsel %vm234_vm1, 1.0, %v746_v28  ;;  %v495_v35 = vsel %vm252_vm3, 1.0, %v746_v28 }
  0x9d   : > { %v240_v27 = vpop.permute.xlu0 %239  ;;  %v262_v33 = vpop.permute.xlu1 %261 }
  0x9e   : > { %vm241_vm2 = vcmp.eq.s32.totalorder %v240_v27, %v230_v25  ;;  %vm263_vm4 = vcmp.eq.s32.totalorder %v262_v33, %v230_v25 }
  0x9f   : > { %v494_v30 = vsel %vm241_vm2, 1.0, %v746_v28  ;;  %v496_v38 = vsel %vm263_vm4, 1.0, %v746_v28 }
  0xa0   : > { %v247_v31 = vadd.f32 %v494_v30, %v493_v29 }
  0xa2   : > { %v248_v32 = vpack.c.bf16 %v247_v31, %v247_v31 }
  0xa4   : > { %v256_v34 = vunpack.c.l.bf16 %v248_v32 }
  0xa6   : > { %v258_v36 = vadd.f32 %v495_v35, %v256_v34 }
  0xa8   : > { %v259_v37 = vpack.c.bf16 %v258_v36, %v258_v36 }
  0xaa   : > { %v267_v39 = vunpack.c.l.bf16 %v259_v37 }
  0xac   : > { %v269_v40 = vadd.f32 %v496_v38, %v267_v39 }
  0xae   : > { %v270_v41 = vpack.c.bf16 %v269_v40, %v269_v40 }
  0xb0   : > { %505 = vmatmul.msk.bf16.vlgmr.msra.gmra.mxu0 %vm296_vm5, %v270_v41  ;;  %514 = vmatmul.msk.bf16.vlgmr.msra.gmra.mxu1 %vm296_vm5, %v270_v41 }
  0xb1   : > { %523 = vmatmul.msk.bf16.vlgmr.msra.gmra.mxu2 %vm296_vm5, %v270_v41 }
 0x12d   : > { %v313_v42 = vpop.f32.mrf.mxu0  ;;  %v344_v43 = vpop.f32.mrf.mxu1 }
 0x12e   : > { %v345_v44 = vadd.f32 %v344_v43, %v313_v42 }
 0x134   : > { %v380_v45 = vpop.f32.mrf.mxu2 }
 0x135   : > { %v384_v46 = vadd.f32 %v380_v45, %v345_v44  ;;  %v315_v47 = vpop.f32.mrf.mxu0  ;;  %v346_v48 = vpop.f32.mrf.mxu1 }
 0x137   : > { %385 = vst [vmem:[%s222_s14] sm:$0xff] %v384_v46 }
 0x138   : > { %693 = shalt.err (!%p690_p8)
}
 0x139   : > { %542 = dma.vmem_to_hbm [thread:$0]  (%p810_p5), %s400_s20, 128, %s402_s22, %s387_s19  }
 0x13c   : > { %v382_v49 = vpop.f32.mrf.mxu2 }
 0x13d PF: > { %p559_p9 = scmp.ge.s32.totalorder %s736_s18, 2  ;;  %s413_s7 = sand.u32 1, %s724_s15  }
 0x13e   : > { %s414_s8 = scalar_lea.sflag [#allocation4], %s413_s7 }
 0x13f   : > { %p552_p10 = pnand %p559_p9, %p814_p6 }
 0x141   : > { %p553_p11 = pneg %p552_p10 }
 0x143   : > { %719 = dma.done.wait (%p553_p11), %s414_s8, 128  }
 0x144   : > { %721 = vsyncadd (%p553_p11), %s414_s8, 4294967168  ;;  %p16_p12 = scmp.ge.s32.totalorder %s797_s21, 4   ;;  %s899_s15 = smov %s728_s16 }
 0x145   : > { %s900_s16 = smov %s732_s17  ;;  %s901_s17 = smov %s808_s24 }
 0x146   : > { %s902_s18 = smov %s797_s21  ;;  %18 = sbr.rel (!%p16_p12) target bundleno = 5 (0x5), region = 80 }
 0x14b   :  { %420 = vsyncpa [#allocation3], 1 }
 0x14c   :  { %422 = vsyncpa [#allocation3 + $0x1], 1 }
 0x14d   :  { %423 = vsyncpa [#allocation6], 1 }
 0x14e   :  { %424 = vsyncpa [#allocation4], 1 }
 0x14f   :  { %426 = vsyncpa [#allocation4 + $0x1], 1 }

</bundles_post_ra>
